<compile_context>
chip_gen: v5e
topology: v5e:2x2
jax: 0.10.0
libtpu: 0.0.40
codegen_flags: <defaults>
</compile_context>

<pallas_src>
import functools

import jax
import jax.numpy as jnp
from jax.experimental import pallas as pl
from jax.experimental.pallas import tpu as pltpu

LANES = 128
MAX_ROW_TILE = 4096   # 4096 x 128 x 4B = 2 MiB per f32 input block
NPAR = 2              # leading "parallel" grid axis (v7x has 2 TensorCores)


def _round_up(value, multiple):
    return ((value + multiple - 1) // multiple) * multiple


def _threshold_count_kernel(thr_ref, rows_ref, x_ref, y_ref, acc_ref, *,
                            block_rows):
    """Accumulate per-(sublane, lane) counts of max(x/y, y/x) <= thr."""
    c = pl.program_id(0)            # parallel (core) axis
    i = pl.program_id(1)            # arbitrary (streaming) axis
    nsteps = pl.num_programs(1)

    @pl.when(i == 0)
    def _():
        acc_ref[...] = jnp.zeros_like(acc_ref)

    thr = thr_ref[0]
    x = x_ref[...].astype(jnp.float32)
    y = y_ref[...].astype(jnp.float32)

    # Divide-free predicate (exact for non-negative finite inputs, the valid
    # domain of this depth-style metric):
    #   max(x/y, y/x) <= thr  <=>  min(x,y) > 0 and max(x,y) <= thr*min(x,y)
    m_lo = jnp.minimum(x, y)
    m_hi = jnp.maximum(x, y)
    ok = (m_lo > 0.0) & (m_hi <= thr * m_lo)

    def _partial(v):
        # Collapse (block_rows, 128) bools to an (8, 128) int32 partial.
        # Splitting the sublane-major dim is layout-free; the reduce is plain
        # VPU adds — no full-block accumulator read-modify-write.
        return v.astype(jnp.int32).reshape(block_rows // 8, 8, LANES).sum(axis=0)

    # Row-block index this grid point is responsible for (the index_map clamps
    # phantom blocks onto the last real block; `rem` masks them to zero here).
    b = c * nsteps + i
    rem = rows_ref[0] - b * block_rows

    @pl.when(rem >= block_rows)        # full block: zero masking cost
    def _():
        acc_ref[...] += _partial(ok)[None]

    @pl.when(rem < block_rows)         # tail or phantom block: row-only mask
    def _():
        row = jax.lax.broadcasted_iota(jnp.int32, (block_rows, LANES), 0)
        acc_ref[...] += _partial(ok & (row < rem))[None]


def threshold_loss(inp, target, threshold):
    """JAX/Pallas equivalent of thresholdLoss.forward. Returns int32 scalar."""
    xf = inp.reshape(-1)
    yf = target.reshape(-1)
    n = xf.shape[0]
    thr = jnp.asarray(threshold, jnp.float32)

    count = jnp.asarray(0, jnp.int32)
    if n == 0:
        return count

    rows = n // LANES
    tail = n - rows * LANES
    if tail:
        # <=127 ragged elements: reference formula in plain jnp (negligible),
        # avoids a full-array pad/copy just to lane-align the kernel input.
        xt = xf[rows * LANES:].astype(jnp.float32)
        yt = yf[rows * LANES:].astype(jnp.float32)
        count = count + jnp.sum(
            jnp.maximum(xt / yt, yt / xt) <= thr).astype(jnp.int32)
    if rows == 0:
        return count

    x2 = (xf if tail == 0 else xf[: rows * LANES]).reshape(rows, LANES)
    y2 = (yf if tail == 0 else yf[: rows * LANES]).reshape(rows, LANES)

    # Row-tile: multiple of the sublane tile of the narrowest input dtype so
    # bf16/int8 inputs stream through the DMA in their native packing.
    def _sublane(dtype):
        return 8 * max(1, 4 // jnp.dtype(dtype).itemsize)

    gran = max(_sublane(x2.dtype), _sublane(y2.dtype))
    block_rows = min(MAX_ROW_TILE, _round_up((rows + NPAR - 1) // NPAR, gran))
    nblocks = pl.cdiv(rows, block_rows)
    nsteps = pl.cdiv(nblocks, NPAR)

    def _in_map(c, i, thr_s, rows_s):
        # Clamp phantom trailing blocks onto the last real block (their
        # contribution is masked to zero in-kernel via `rem`).
        return (jnp.minimum(c * nsteps + i, nblocks - 1), 0)

    kernel = functools.partial(_threshold_count_kernel, block_rows=block_rows)

    bytes_in = rows * LANES * (jnp.dtype(x2.dtype).itemsize
                               + jnp.dtype(y2.dtype).itemsize)
    cost = pl.CostEstimate(
        flops=6 * rows * LANES,
        transcendentals=0,
        bytes_accessed=bytes_in + NPAR * 8 * LANES * 4,
    )

    acc = pl.pallas_call(
        kernel,
        out_shape=jax.ShapeDtypeStruct((NPAR, 8, LANES), jnp.int32),
        grid_spec=pltpu.PrefetchScalarGridSpec(
            num_scalar_prefetch=2,
            grid=(NPAR, nsteps),
            in_specs=[
                pl.BlockSpec((block_rows, LANES), _in_map),
                pl.BlockSpec((block_rows, LANES), _in_map),
            ],
            # One private (1, 8, 128) accumulator block per parallel slot; the
            # same block is revisited across the arbitrary axis (VMEM-resident).
            out_specs=pl.BlockSpec((1, 8, LANES),
                                   lambda c, i, thr_s, rows_s: (c, 0, 0)),
        ),
        compiler_params=pltpu.CompilerParams(
            dimension_semantics=("parallel", "arbitrary"),
        ),
        cost_estimate=cost,
    )(thr.reshape(1), jnp.asarray(rows, jnp.int32).reshape(1), x2, y2)

    # TODO(synk): fold this trivial 8 KiB reduction into the kernel's last grid
    #             step (SMEM scalar output) to drop the trailing XLA reduce.
    return count + jnp.sum(acc).astype(jnp.int32)


if __name__ == "__main__":
    key = jax.random.PRNGKey(0)
    k1, k2 = jax.random.split(key)

    # Small NCHW-shaped positive inputs (depth predictions / ground truth).
    shape = (2, 4, 16, 16)
    inp = jax.random.uniform(k1, shape, jnp.float32, minval=0.5, maxval=2.0)
    tgt = jax.random.uniform(k2, shape, jnp.float32, minval=0.5, maxval=2.0)
    threshold = 1.25

    valid = threshold_loss(inp, tgt, threshold)
    valid = jax.block_until_ready(valid)

    # Pure-JAX reference check (PyTorch formula).
    ref = jnp.sum(jnp.maximum(inp / tgt, tgt / inp) <= threshold).astype(jnp.int32)
    assert int(valid) == int(ref), (int(valid), int(ref))

    print("KERNEL_OK")
</pallas_src>

<mosaic_0001>
module attributes {stable_mosaic.version = 11 : i64} {
  func.func @_threshold_count_kernel(%arg0: i32, %arg1: i32, %arg2: memref<1xf32, #tpu.memory_space<smem>>, %arg3: memref<1xi32, #tpu.memory_space<smem>>, %arg4: memref<8x128xf32, #tpu.memory_space<vmem>>, %arg5: memref<8x128xf32, #tpu.memory_space<vmem>>, %arg6: memref<1x8x128xi32, #tpu.memory_space<vmem>>) attributes {dimension_semantics = [#tpu.dimension_semantics<parallel>, #tpu.dimension_semantics<arbitrary>], iteration_bounds = array<i64: 2, 1>, scalar_prefetch = 2 : i64, scratch_operands = 0 : i64, tpu.core_type = #tpu.core_type<tc>, window_params = [{transform_indices = @transform_0, window_bounds = array<i64: 8, 128>}, {transform_indices = @transform_1, window_bounds = array<i64: 8, 128>}, {transform_indices = @transform_2, window_bounds = array<i64: 1, 8, 128>}]} {
    %c0_i32 = arith.constant 0 : i32
    %0 = arith.cmpi eq, %arg1, %c0_i32 : i32
    %1 = arith.extui %0 : i1 to i32
    %c0_i32_0 = arith.constant 0 : i32
    %2 = arith.cmpi ne, %1, %c0_i32_0 : i32
    scf.if %2 {
      %c0_i32_10 = arith.constant 0 : i32
      %25 = vector.broadcast %c0_i32_10 : i32 to vector<1x8x128xi32>
      %c0_11 = arith.constant 0 : index
      %c0_12 = arith.constant 0 : index
      %c0_13 = arith.constant 0 : index
      %26 = vector.load %arg6[%c0_11, %c0_12, %c0_13] : memref<1x8x128xi32, #tpu.memory_space<vmem>>, vector<1x8x128xi32>
      tpu.vector_store %arg6[%c0_11, %c0_12, %c0_13], %25 {strides = array<i32>} : memref<1x8x128xi32, #tpu.memory_space<vmem>>, vector<1x8x128xi32>,
    } else {
    }
    %c0 = arith.constant 0 : index
    %3 = memref.load %arg2[%c0] : memref<1xf32, #tpu.memory_space<smem>>
    %c0_1 = arith.constant 0 : index
    %c0_2 = arith.constant 0 : index
    %4 = vector.load %arg4[%c0_1, %c0_2] : memref<8x128xf32, #tpu.memory_space<vmem>>, vector<8x128xf32>
    %c0_3 = arith.constant 0 : index
    %c0_4 = arith.constant 0 : index
    %5 = vector.load %arg5[%c0_3, %c0_4] : memref<8x128xf32, #tpu.memory_space<vmem>>, vector<8x128xf32>
    %6 = arith.minimumf %4, %5 : vector<8x128xf32>
    %7 = arith.maximumf %4, %5 : vector<8x128xf32>
    %cst = arith.constant 0.000000e+00 : f32
    %8 = vector.broadcast %cst : f32 to vector<8x128xf32>
    %9 = arith.cmpf ogt, %6, %8 : vector<8x128xf32>
    %10 = vector.broadcast %3 : f32 to vector<8x128xf32>
    %11 = arith.mulf %10, %6 : vector<8x128xf32>
    %12 = arith.cmpf ole, %7, %11 : vector<8x128xf32>
    %13 = arith.andi %9, %12 : vector<8x128xi1>
    %c1_i32 = arith.constant 1 : i32
    %14 = arith.muli %arg0, %c1_i32 : i32
    %15 = arith.addi %14, %arg1 : i32
    %c0_5 = arith.constant 0 : index
    %16 = memref.load %arg3[%c0_5] : memref<1xi32, #tpu.memory_space<smem>>
    %c8_i32 = arith.constant 8 : i32
    %17 = arith.muli %15, %c8_i32 : i32
    %18 = arith.subi %16, %17 : i32
    %c8_i32_6 = arith.constant 8 : i32
    %19 = arith.cmpi sge, %18, %c8_i32_6 : i32
    %20 = arith.extui %19 : i1 to i32
    %c0_i32_7 = arith.constant 0 : i32
    %21 = arith.cmpi ne, %20, %c0_i32_7 : i32
    scf.if %21 {
      %c0_10 = arith.constant 0 : index
      %c0_11 = arith.constant 0 : index
      %c0_12 = arith.constant 0 : index
      %25 = vector.load %arg6[%c0_10, %c0_11, %c0_12] : memref<1x8x128xi32, #tpu.memory_space<vmem>>, vector<1x8x128xi32>
      %26 = arith.extui %13 : vector<8x128xi1> to vector<8x128xi32>
      %27 = vector.shape_cast %26 : vector<8x128xi32> to vector<1x8x128xi32>
      %cst_13 = arith.constant dense<0> : vector<8x128xi32>
      %28 = vector.multi_reduction <add>, %27, %cst_13 [0] : vector<1x8x128xi32> to vector<8x128xi32>
      %29 = vector.shape_cast %28 : vector<8x128xi32> to vector<1x8x128xi32>
      %30 = arith.addi %25, %29 : vector<1x8x128xi32>
      %c0_14 = arith.constant 0 : index
      %c0_15 = arith.constant 0 : index
      %c0_16 = arith.constant 0 : index
      %31 = vector.load %arg6[%c0_14, %c0_15, %c0_16] : memref<1x8x128xi32, #tpu.memory_space<vmem>>, vector<1x8x128xi32>
      tpu.vector_store %arg6[%c0_14, %c0_15, %c0_16], %30 {strides = array<i32>} : memref<1x8x128xi32, #tpu.memory_space<vmem>>, vector<1x8x128xi32>,
    } else {
    }
    %c8_i32_8 = arith.constant 8 : i32
    %22 = arith.cmpi slt, %18, %c8_i32_8 : i32
    %23 = arith.extui %22 : i1 to i32
    %c0_i32_9 = arith.constant 0 : i32
    %24 = arith.cmpi ne, %23, %c0_i32_9 : i32
    scf.if %24 {
      %25 = tpu.iota {dimensions = array<i32: 0>} : vector<8x128xi32>
      %c0_10 = arith.constant 0 : index
      %c0_11 = arith.constant 0 : index
      %c0_12 = arith.constant 0 : index
      %26 = vector.load %arg6[%c0_10, %c0_11, %c0_12] : memref<1x8x128xi32, #tpu.memory_space<vmem>>, vector<1x8x128xi32>
      %27 = vector.broadcast %18 : i32 to vector<8x128xi32>
      %28 = arith.cmpi slt, %25, %27 : vector<8x128xi32>
      %29 = arith.andi %13, %28 : vector<8x128xi1>
      %30 = arith.extui %29 : vector<8x128xi1> to vector<8x128xi32>
      %31 = vector.shape_cast %30 : vector<8x128xi32> to vector<1x8x128xi32>
      %cst_13 = arith.constant dense<0> : vector<8x128xi32>
      %32 = vector.multi_reduction <add>, %31, %cst_13 [0] : vector<1x8x128xi32> to vector<8x128xi32>
      %33 = vector.shape_cast %32 : vector<8x128xi32> to vector<1x8x128xi32>
      %34 = arith.addi %26, %33 : vector<1x8x128xi32>
      %c0_14 = arith.constant 0 : index
      %c0_15 = arith.constant 0 : index
      %c0_16 = arith.constant 0 : index
      %35 = vector.load %arg6[%c0_14, %c0_15, %c0_16] : memref<1x8x128xi32, #tpu.memory_space<vmem>>, vector<1x8x128xi32>
      tpu.vector_store %arg6[%c0_14, %c0_15, %c0_16], %34 {strides = array<i32>} : memref<1x8x128xi32, #tpu.memory_space<vmem>>, vector<1x8x128xi32>,
    } else {
    }
    return
  }
  func.func @transform_0(%arg0: i32, %arg1: i32, %arg2: memref<1xf32, #tpu.memory_space<smem>>, %arg3: memref<1xi32, #tpu.memory_space<smem>>) -> (i32, i32) {
    %c1_i32 = arith.constant 1 : i32
    %0 = arith.muli %arg0, %c1_i32 : i32
    %1 = arith.addi %0, %arg1 : i32
    %c1_i32_0 = arith.constant 1 : i32
    %2 = arith.minsi %1, %c1_i32_0 : i32
    %c0_i32 = arith.constant 0 : i32
    %c0_i32_1 = arith.constant 0 : i32
    return %2, %c0_i32 : i32, i32
  }
  func.func @transform_1(%arg0: i32, %arg1: i32, %arg2: memref<1xf32, #tpu.memory_space<smem>>, %arg3: memref<1xi32, #tpu.memory_space<smem>>) -> (i32, i32) {
    %c1_i32 = arith.constant 1 : i32
    %0 = arith.muli %arg0, %c1_i32 : i32
    %1 = arith.addi %0, %arg1 : i32
    %c1_i32_0 = arith.constant 1 : i32
    %2 = arith.minsi %1, %c1_i32_0 : i32
    %c0_i32 = arith.constant 0 : i32
    %c0_i32_1 = arith.constant 0 : i32
    return %2, %c0_i32 : i32, i32
  }
  func.func @transform_2(%arg0: i32, %arg1: i32, %arg2: memref<1xf32, #tpu.memory_space<smem>>, %arg3: memref<1xi32, #tpu.memory_space<smem>>) -> (i32, i32, i32) {
    %c0_i32 = arith.constant 0 : i32
    %c0_i32_0 = arith.constant 0 : i32
    %c0_i32_1 = arith.constant 0 : i32
    return %arg0, %c0_i32, %c0_i32_0 : i32, i32, i32
  }
}

</mosaic_0001>

<bundles_post_ra>
// kernel: tpu_custom_call.1
= control target key start
LH: loop header
LB: loop body
LE: loop exit
PB: predicated region body
PF: predicated region fallthrough
CT: control target
= control target key end

     0   :  { %s899_s0 = inlined_call_operand.<no memory space> [shape: f32[1], index: 0, kind: input, shape index: {}]   ;;  %s900_s1 = inlined_call_operand.<no memory space> [shape: s32[1], index: 1, kind: input, shape index: {}]   ;;  %s901_s2 = inlined_call_operand.hbm [shape: f32[16,128], index: 2, kind: input, shape index: {}]   ;;  %s902_s3 = inlined_call_operand.hbm [shape: f32[16,128], index: 3, kind: input, shape index: {}]   ;;  %s903_s4 = inlined_call_operand.hbm [shape: s32[2,8,128], index: 4, kind: output, shape index: {}]  }
   0x1   :  { %906 = sst [smem:[#allocation16_spill]] %s901_s2 }
   0x2   :  { %9 = sst [smem:[#allocation3]] %s899_s0 }
   0x3   :  { %10 = sst [smem:[#allocation4]] %s900_s1 }
   0x4   :  { %11 = vsyncpa [#allocation6], 0 }
   0x5   :  { %13 = vsyncpa [#allocation6 + $0x1], 0 }
   0x6   :  { %14 = vsyncpa [#allocation9], 0 }
   0x7   :  { %16 = vsyncpa [#allocation9 + $0x1], 0 }
   0x8   :  { %17 = vsyncpa [#allocation7], 0 }
   0x9   :  { %19 = vsyncpa [#allocation7 + $0x1], 0  ;;  %s716_s19 = smov 0   ;;  %s718_s20 = smov 0  }
   0xa   :  { %s720_s21 = smov 0   ;;  %s722_s22 = smov 0  }
   0xb   :  { %s724_s23 = smov 0   ;;  %s726_s0 = smov 0  }
   0xc   :  { %s728_s24 = smov 0   ;;  %s730_s1 = smov 0  }
   0xd   :  { %s732_s25 = smov 0  }
   0xe LB: > { %907 = sst [smem:[#allocation14_spill]] %s676_s1  ;;  %s397_s26 = sadd.s32 4294967295, %s680_s25   ;;  %s680_s25 = sphi %s732_s25, %s25_s25   ;;  %s676_s1 = sphi %s730_s1, %s917_s1   ;;  %s672_s24 = sphi %s728_s24, %s916_s24   ;;  %s668_s0 = sphi %s726_s0, %s923_s0   ;;  %s664_s23 = sphi %s724_s23, %s922_s23   ;;  %s660_s22 = sphi %s722_s22, %s921_s22   ;;  %s656_s21 = sphi %s720_s21, %s920_s21   ;;  %s652_s20 = sphi %s718_s20, %s919_s20   ;;  %s648_s19 = sphi %s716_s19, %s918_s19  }
   0xf   : > { %s398_s27 = sadd.s32 4294967294, %s680_s25   ;;  %s37_s28 = sadd.s32 1, %s676_s1 }
  0x10   : > { %p42_p0 = scmp.lt.s32.totalorder %s676_s1, 1  ;;  %p39_p1 = scmp.ge.s32.totalorder %s37_s28, 2 }
  0x11   : > { %s50_s29 = sadd.s32 1, %s668_s0  ;;  %p57_p2 = scmp.ne.s32.totalorder %s668_s0, %s664_s23 }
  0x12   : > { %s765_s30 = scalar_select %p42_p0, %s676_s1, 1 }
  0x13   : > { %s925_s28 = smov (%p39_p1, %s37_s28), 0  ;;  %p58_p3 = scmp.eq.s32.totalorder %s680_s25, 0 }
  0x14   : > { %908 = sst [smem:[#allocation15_spill]] %s925_s28  ;;  %p45_p4 = scmp.lt.s32.totalorder %s925_s28, 1 }
  0x15   : > { %p63_p5 = scmp.ne.s32.totalorder %s664_s23, %s660_s22  ;;  %p774_p6 = por %p58_p3, %p57_p2 }
  0x16   : > { %p64_p7 = scmp.eq.s32.totalorder %s397_s26, 0  ;;  %s105_s8 = ssub.s32 %s676_s1, %s925_s28 }
  0x17   : > { %s46_s6 = scalar_select %p45_p4, %s925_s28, 1 }
  0x18   : > { %p779_p8 = por %p64_p7, %p63_p5  ;;  %p106_p9 = scmp.eq.s32.totalorder %s105_s8, 0 }
  0x19   : > { %s47_s9 = ssub.s32 %s765_s30, %s46_s6  ;;  %s108_s10 = sadd.s32 1, %s656_s21 }
  0x1a   : > { %p48_p10 = scmp.eq.s32.totalorder %s47_s9, 0  ;;  %p118_p11 = scmp.ne.s32.totalorder %s656_s21, %s652_s20 }
  0x1b   : > { %s788_s11 = scalar_select %p106_p9, %s656_s21, %s108_s10  }
  0x1c   : > { %s791_s12 = scalar_select %p48_p10, %s668_s0, %s50_s29  }
  0x1d   : > { %p119_p12 = scmp.eq.s32.totalorder %s397_s26, 1  ;;  %p124_p13 = scmp.ne.s32.totalorder %s652_s20, %s648_s19 }
  0x1e   : > { %p125_p0 = scmp.eq.s32.totalorder %s398_s27, 1  ;;  %p400_p2 = scmp.ge.s32.totalorder %s680_s25, 2 }
  0x1f   : > { %p797_p1 = por %p119_p12, %p118_p11  ;;  %p433_p4 = scmp.lt.s32.totalorder %s680_s25, 2 }
  0x20   : > { %p802_p3 = por %p125_p0, %p124_p13  ;;  %s145_s15 = sand.u32 1, %s668_s0  }
  0x21   : > { %s402_s16 = sshll.u32 %s765_s30, 3  ;;  %s401_s17 = sshll.u32 %s145_s15, 3 }
  0x22   : > { %s913_s2 = sld [smem:[#allocation16_spill]]  ;;  %s149_s27 = scalar_lea.vmem [#allocation5], %s401_s17 }
  0x23   : > { %s160_s6 = sshll.u32 %s149_s27, 4  ;;  %p423_p5 = pnand %p433_p4, %p774_p6  ;;  %s161_s6 = int_to_ptr.vmem [resolvable:$true] %s160_s6 }
  0x24   : > { %p405_p7 = scmp.ge.s32.totalorder %s680_s25, 1  ;;  %p187_p9 = scmp.lt.s32.totalorder %s680_s25, 3 }
  0x25   : > { %s146_s8 = scalar_lea.sflag [#allocation6], %s145_s15  ;;  %s178_s30 = scalar_lea.hbm %s902_s3, %s402_s16 }
  0x26   : > { %p188_p10 = pnand %p405_p7, %p187_p9  ;;  %s180_s28 = sshll.u32 %s178_s30, 4  ;;  %s181_s28 = int_to_ptr.hbm [resolvable:$true] %s180_s28 }
  0x27   : > { %s171_s1 = scalar_lea.vmem [#allocation8], %s401_s17  ;;  %s168_s22 = scalar_lea.sflag [#allocation9], %s145_s15 }
  0x28   : > { %s156_s26 = scalar_lea.hbm %s913_s2, %s402_s16  ;;  %s182_s18 = sshll.u32 %s171_s1, 4  ;;  %s183_s18 = int_to_ptr.vmem [resolvable:$true] %s182_s18 }
  0x29   : > { %s158_s29 = sshll.u32 %s156_s26, 4  ;;  %191 = sbr.rel (%p188_p10) target bundleno = 101 (0x65), region = 28  ;;  %s159_s29 = int_to_ptr.hbm [resolvable:$true] %s158_s29 }
  0x2a   : > { %425 = dma.hbm_to_vmem [thread:$0]  (!%p423_p5), %s159_s29, 128, %s161_s6, %s146_s8  }
  0x2b   : > { %428 = dma.hbm_to_vmem [thread:$0]  (!%p423_p5), %s181_s28, 128, %s183_s18, %s168_s22  }
  0x2c   : > { %s193_s5 = sand.u32 (!%p188_p10), 1, %s664_s23  }
  0x2d   : > { %s406_s26 = sshll.u32 (!%p188_p10), %s193_s5, 3  ;;  %s194_s27 = scalar_lea.sflag (!%p188_p10), [#allocation6], %s193_s5 }
  0x2e   : > { %s197_s2 = scalar_lea.vmem [#allocation5], %s406_s26 }
  0x2f   : > { %635 = dma.done.wait (%p779_p8), %s194_s27, 128  }
  0x30   : > { %637 = vsyncadd (%p779_p8), %s194_s27, 4294967168  ;;  %s204_s16 = scalar_lea.sflag [#allocation9], %s193_s5  ;;  %s207_s17 = scalar_lea.vmem [#allocation8], %s406_s26 }
  0x31   : > { %639 = dma.done.wait (%p779_p8), %s204_s16, 128  }
  0x32   : > { %641 = vsyncadd (%p779_p8), %s204_s16, 4294967168  ;;  %s231_s1 = sand.u32 1, %s652_s20   ;;  %s245_s28 = sld [smem:[#allocation3]]  ;;  %v682_v0 = vmov 0   ;;  %v246_v1 = vld [vmem:[%s197_s2] sm:$0xff]  ;;  %v247_v2 = vld [vmem:[%s207_s17] sm:$0xff] }
  0x33   : > { %s408_s15 = sshll.u32 %s231_s1, 3  ;;  %s256_s29 = sld [smem:[#allocation4]]  ;;  %v248_v4 = vmin.f32 %v246_v1, %v247_v2  ;;  %v249_v5 = vmax.f32 %v246_v1, %v247_v2 }
  0x34   : > { %s831_s6 = scalar_lea.vmem [#allocation10], %s408_s15  ;;  %s409_s8 = sshll.u32 %s672_s24, 3 }
  0x35   : > { %244 = vst [vmem:[%s831_s6] sm:$0xff] %v682_v0  ;;  %vm250_vm0 = vcmp.gt.f32.partialorder %v248_v4, 0.0 }
  0x38   : > { %v251_v3 = vstv %s245_s28 }
  0x39   : > { %s258_s7 = ssub.s32 %s256_s29, %s409_s8  ;;  %v252_v6 = vmul.f32 %v251_v3, %v248_v4 }
  0x3a   : > { %p410_p6 = scmp.lt.s32.totalorder %s258_s7, 8 }
  0x3b   : > { %vm253_vm1 = vcmp.le.f32.partialorder %v249_v5, %v252_v6 }
  0x3c   : > { %vm837_vm2 = vmand %vm250_vm0, %vm253_vm1  ;;  %262 = sbr.rel (%p410_p6) target bundleno = 70 (0x46), region = 44 }
  0x41   : > { %v263_v8 = vld [vmem:[%s831_s6] sm:$0xff]  ;;  %v683_v9 = vmov 0  }
  0x42   : > { %v264_v10 = vsel %vm837_vm2, 1, %v683_v9 }
  0x43   : > { %v265_v11 = vadd.s32 %v264_v10, %v263_v8 }
  0x45   : > { %266 = vst [vmem:[%s831_s6] sm:$0xff] %v265_v11 }
  0x46 PF: > { %p411_p8 = scmp.ge.s32.totalorder %s258_s7, 8 }
  0x48   : > { %270 = sbr.rel (%p411_p8) target bundleno = 87 (0x57), region = 48 }
  0x4d   : > { %v271_v12 = vlaneseq  ;;  %v274_v13 = vstv %s258_s7  ;;  %v273_v15 = vld [vmem:[%s831_s6] sm:$0xff]  ;;  %v684_v16 = vmov 0  }
  0x4f   : > { %v272_v14 = vshrl.u32 %v271_v12, 7 }
  0x51   : > { %vm275_vm3 = vcmp.lt.s32.totalorder %v272_v14, %v274_v13 }
  0x52   : > { %vm276_vm4 = vmand %vm837_vm2, %vm275_vm3 }
  0x53   : > { %v277_v17 = vsel %vm276_vm4, 1, %v684_v16 }
  0x54   : > { %v278_v18 = vadd.s32 %v277_v17, %v273_v15 }
  0x56   : > { %279 = vst [vmem:[%s831_s6] sm:$0xff] %v278_v18 }
  0x57 PF: > { %s291_s10 = scalar_lea.hbm %s903_s4, %s409_s8  ;;  %s293_s30 = sshll.u32 %s831_s6, 4  ;;  %s294_s30 = int_to_ptr.vmem [resolvable:$true] %s293_s30 }
  0x58   : > { %s295_s18 = sshll.u32 %s291_s10, 4  ;;  %s281_s22 = scalar_lea.sflag [#allocation7], %s231_s1  ;;  %s296_s18 = int_to_ptr.hbm [resolvable:$true] %s295_s18 }
  0x59   : > { %s584_s5 = sshra.s32 %s296_s18, 4  ;;  %s590_s16 = scalar_lea.hbm %s903_s4, 16  ;;  %s585_s5 = int_to_ptr.hbm [resolvable:$true] %s584_s5 }
  0x5a   : > { %s586_s26 = scalar_lea.hbm %s585_s5, 8  ;;  %p591_p0 = scmp.lt.s32.totalorder %s585_s5, %s903_s4 }
  0x5b   : > { %p587_p11 = scmp.ne.s32.totalorder %s585_s5, %s586_s26  ;;  %p592_p4 = scmp.lt.s32.totalorder %s590_s16, %s586_s26 }
  0x5d   : > { %p588_p12 = pnand %p587_p11, %p797_p1  ;;  %p593_p5 = por %p592_p4, %p591_p0 }
  0x5f   : > { %p589_p13 = pneg %p588_p12 }
  0x61   : > { %p594_p7 = pnand %p593_p5, %p589_p13 }
  0x63   : > { %597 = shalt.err (!%p594_p7)
}
  0x64   : > { %420 = dma.vmem_to_hbm [thread:$0]  (%p797_p1), %s294_s30, 128, %s296_s18, %s281_s22  }
  0x65 PF: > { %s307_s1 = sand.u32 1, %s648_s19   ;;  %p430_p9 = pnand %p400_p2, %p802_p3 }
  0x66   : > { %s308_s15 = scalar_lea.sflag [#allocation7], %s307_s1 }
  0x67   : > { %p431_p10 = pneg %p430_p9 }
  0x69   : > { %643 = dma.done.wait (%p431_p10), %s308_s15, 128  }
  0x6a   : > { %645 = vsyncadd (%p431_p10), %s308_s15, 4294967168  ;;  %s25_s25 = sadd.s32 1, %s680_s25   ;;  %s916_s24 = sld [smem:[#allocation14_spill]] }
  0x6b   : > { %p22_p6 = scmp.ge.s32.totalorder %s25_s25, 4   ;;  %s917_s1 = sld [smem:[#allocation15_spill]] }
  0x6c   : > { %s918_s19 = smov %s652_s20  ;;  %s919_s20 = smov %s656_s21 }
  0x6d   : > { %s920_s21 = smov %s788_s11  ;;  %s921_s22 = smov %s664_s23 }
  0x6e   : > { %s922_s23 = smov %s668_s0  ;;  %s923_s0 = smov %s791_s12 }
  0x6f   :  { %24 = sbr.rel (!%p22_p6) target bundleno = 14 (0xe), region = 98 }
  0x74   :  { %314 = vsyncpa [#allocation6], 1 }
  0x75   :  { %316 = vsyncpa [#allocation6 + $0x1], 1 }
  0x76   :  { %317 = vsyncpa [#allocation9], 1 }
  0x77   :  { %319 = vsyncpa [#allocation9 + $0x1], 1 }
  0x78   :  { %320 = vsyncpa [#allocation7], 1 }
  0x79   :  { %322 = vsyncpa [#allocation7 + $0x1], 1 }

</bundles_post_ra>
